<compile_context>
chip_gen: v7x
topology: tpu7x:2x2x1
jax: 0.10.0
libtpu: 0.0.40
codegen_flags: <defaults>
</compile_context>

<pallas_src>
import functools

import numpy as np
import jax
import jax.numpy as jnp
from jax import lax
from jax.experimental import pallas as pl
from jax.experimental.pallas import tpu as pltpu

_VMEM = pl.BlockSpec(memory_space=pltpu.MemorySpace.VMEM)


def _round_up(x, m):
    return -(-x // m) * m


def _rep_spec(shape):
    zeros = (0,) * len(shape)
    return pl.BlockSpec(shape, lambda i, _z=zeros: _z)


# ----------------------------- node-side fused linear -----------------------------

def _node_linear_kernel(xt_ref, wt_ref, b_ref, o_ref):
    # o[2A, N] = W^T[2A, Din] @ x^T[Din, N] + b[2A, 1]   (lane-dense output on N)
    o_ref[...] = (jnp.dot(wt_ref[...], xt_ref[...],
                          preferred_element_type=jnp.float32) + b_ref[...])


def node_linear_t(x_t, w, b):
    # x_t: [Din, N] (already transposed / lane-dense), w: [Din, Dout], b: [Dout] -> [Dout, N]
    n = x_t.shape[1]
    dout = w.shape[1]
    return pl.pallas_call(
        _node_linear_kernel,
        out_shape=jax.ShapeDtypeStruct((dout, n), jnp.float32),
        in_specs=[_VMEM, _VMEM, _VMEM],
        out_specs=_VMEM,
    )(x_t, w.T, b.reshape(-1, 1))


# ------------- fused edge kernel: linears + pairwise tables + flag classifier -------------

def _edge_tables_kernel(xt_ref, xrt_ref, wf_ref, bf_ref, wu_ref, bu_ref,
                        wfl_ref, bfl_ref, wc_ref, bc_ref,
                        fv_ref, uv_ref, keep_ref, *, num_acts, p_pad):
    a, pp = num_acts, p_pad
    x = xt_ref[...]                     # [din_e, T]   (T = tile_e edges on lanes)
    xr = xrt_ref[...]
    wf, bf = wf_ref[...], bf_ref[...]   # [A*P8, din_e], [A*P8, 1]
    wu, bu = wu_ref[...], bu_ref[...]
    wfl, bfl = wfl_ref[...], bfl_ref[...]
    wc, bc = wc_ref[...], bc_ref[...]

    # joint factor / util components, lane-flipped: row i*P8+p <-> (action i, pair p)
    fcf = jnp.dot(wf, x, preferred_element_type=jnp.float32) + bf     # [A*P8, T]
    fcrf = jnp.dot(wf, xr, preferred_element_type=jnp.float32) + bf
    ucf = jnp.dot(wu, x, preferred_element_type=jnp.float32) + bu
    ucrf = jnp.dot(wu, xr, preferred_element_type=jnp.float32) + bu

    # Pairwise tables on the VPU (lane-dense, no 5-wide batched MXU matmuls and
    # no [T,5,5] -> [5,5,T] relayout):  fv[i, j, :] = sum_p fc[i,p,:] * fcr[j,p,:]
    # Every slice below is a full sublane tile (P padded to 8 in the packed weights).
    for i in range(a):
        fci = fcf[i * pp:(i + 1) * pp]               # [P8, T]
        uci = ucf[i * pp:(i + 1) * pp]
        f_rows, u_rows = [], []
        for j in range(a):
            fcrj = fcrf[j * pp:(j + 1) * pp]
            ucrj = ucrf[j * pp:(j + 1) * pp]
            f_rows.append(jnp.sum(fci * fcrj, axis=0, keepdims=True))   # [1, T]
            u_rows.append(jnp.sum(uci * ucrj, axis=0, keepdims=True))
        fv_ref[i] = jnp.concatenate(f_rows, axis=0)  # [A, T]
        uv_ref[i] = jnp.concatenate(u_rows, axis=0)

    # edge-flag classifier -> hard keep decision, emitted lane-dense as [1, T]
    ef = jnp.dot(wfl, x, preferred_element_type=jnp.float32) + bfl     # [P8, T]
    efr = jnp.dot(wfl, xr, preferred_element_type=jnp.float32) + bfl
    lg = jnp.dot(wc, ef * efr, preferred_element_type=jnp.float32) + bc  # [2, T]
    keep_ref[...] = (lg[0:1, :] >= lg[1:2, :]).astype(jnp.float32)


def edge_tables(x_t, xr_t, wf, bf, wu, bu, wfl, bfl, wc, bc, *, num_acts, p_pad, tile_e):
    din, e_pad = x_t.shape
    a = num_acts
    grid = (e_pad // tile_e,)
    kernel = functools.partial(_edge_tables_kernel, num_acts=num_acts, p_pad=p_pad)
    x_spec = pl.BlockSpec((din, tile_e), lambda i: (0, i))
    tab_spec = pl.BlockSpec((a, a, tile_e), lambda i: (0, 0, i))
    return pl.pallas_call(
        kernel,
        out_shape=(jax.ShapeDtypeStruct((a, a, e_pad), jnp.float32),
                   jax.ShapeDtypeStruct((a, a, e_pad), jnp.float32),
                   jax.ShapeDtypeStruct((1, e_pad), jnp.float32)),
        grid=grid,
        in_specs=[x_spec, x_spec,
                  _rep_spec(wf.shape), _rep_spec(bf.shape),
                  _rep_spec(wu.shape), _rep_spec(bu.shape),
                  _rep_spec(wfl.shape), _rep_spec(bfl.shape),
                  _rep_spec(wc.shape), _rep_spec(bc.shape)],
        out_specs=(tab_spec, tab_spec, pl.BlockSpec((1, tile_e), lambda i: (0, i))),
        compiler_params=pltpu.CompilerParams(dimension_semantics=("parallel",)),
    )(x_t, xr_t, wf, bf, wu, bu, wfl, bfl, wc, bc)


# ----------------------------- message-passing kernel (hot loop) -----------------------------

def _log_softmax_ax0(x):
    x_max = jnp.max(x, axis=0, keepdims=True)
    s = x - x_max
    return s - jnp.log(jnp.sum(jnp.exp(s), axis=0, keepdims=True))


def _mp_kernel(sif_ref, dif_ref, siu_ref, diu_ref, fv_ref, uv_ref, keep_ref,
               ssrcT_ref, sdstT_ref, sdst_ref, out_ref, *, num_iters, num_acts, unroll):
    a = num_acts
    fv = fv_ref[...]                     # [A, A, E]   fv[i, j, e] == factor_vals[e, i, j]
    uv = uv_ref[...]                     # [A, A, E]
    s_srcT = ssrcT_ref[...]              # [N, E] one-hot columns (bf16, exact)
    s_dstT = sdstT_ref[...]              # [N, E]
    s_dst = sdst_ref[...]                # [E, N] pre-transposed for the scatter
    src_if = sif_ref[...]                # [A, E] loop-invariant per-edge gathers
    dst_if = dif_ref[...]
    src_iu = siu_ref[...]
    dst_iu = diu_ref[...]
    e = fv.shape[-1]
    n = s_srcT.shape[0]
    sdt = s_srcT.dtype

    flag = jnp.broadcast_to(keep_ref[...], (a, e))            # hoisted out of the loop

    def body(_, carry):
        node_mm, node_um, msg_e, rev_msg_e, util_e, rev_util_e = carry
        # gathers: [A, N] @ [N, E] -> [A, E]  (bf16 MXU path, f32 accumulate)
        src_mm = jnp.dot(node_mm.astype(sdt), s_srcT, preferred_element_type=jnp.float32)
        dst_mm = jnp.dot(node_mm.astype(sdt), s_dstT, preferred_element_type=jnp.float32)
        src_um = jnp.dot(node_um.astype(sdt), s_srcT, preferred_element_type=jnp.float32)
        dst_um = jnp.dot(node_um.astype(sdt), s_dstT, preferred_element_type=jnp.float32)

        # ---- forward model message (stabilized logsumexp; exp shared with softmax)
        agg = src_mm - rev_msg_e + src_if                      # [A_j, E]
        m = fv + agg[None, :, :]                               # [A_i, A_j, E]
        m_max = jnp.max(m, axis=1, keepdims=True)
        p_f = jnp.exp(m - m_max)
        s_f = jnp.sum(p_f, axis=1)                             # [A_i, E]
        inv_f = pl.reciprocal(s_f, approx=True)
        lse = jnp.log(s_f) + m_max[:, 0, :]
        msg_new = _log_softmax_ax0(lse) * flag                 # [A, E]

        # ---- forward utility message (softmax over j == p_f * inv_f)
        util = src_um - rev_util_e + src_iu
        tu = uv + util[None, :, :]
        util_new = (jnp.sum(tu * p_f, axis=1) * inv_f) * flag

        # ---- reverse model message: factor_vals^T used implicitly by swapping axes
        agg_r = dst_mm - msg_e + dst_if                        # [A_a, E]
        r = fv + agg_r[:, None, :]
        r_max = jnp.max(r, axis=0, keepdims=True)
        p_r = jnp.exp(r - r_max)
        s_r = jnp.sum(p_r, axis=0)
        inv_r = pl.reciprocal(s_r, approx=True)
        lse_r = jnp.log(s_r) + r_max[0]
        rev_msg_new = _log_softmax_ax0(lse_r) * flag

        # ---- reverse utility message
        util_r = dst_um - util_e + dst_iu
        tur = uv + util_r[:, None, :]
        rev_util_new = (jnp.sum(tur * p_r, axis=0) * inv_r) * flag

        # ---- graph_reduce_func: scatter-add at destination nodes (plain NN matmuls,
        #      no per-iteration sublane concat, no transposed-RHS dot)
        node_mm_new = jnp.dot(msg_new.astype(sdt), s_dst, preferred_element_type=jnp.float32)
        node_um_new = jnp.dot(util_new.astype(sdt), s_dst, preferred_element_type=jnp.float32)
        return (node_mm_new, node_um_new, msg_new, rev_msg_new, util_new, rev_util_new)

    init = (jnp.zeros((a, n), jnp.float32), jnp.zeros((a, n), jnp.float32),
            jnp.zeros((a, e), jnp.float32), jnp.zeros((a, e), jnp.float32),
            jnp.zeros((a, e), jnp.float32), jnp.zeros((a, e), jnp.float32))
    final = lax.fori_loop(0, num_iters, body, init, unroll=unroll)
    out_ref[...] = final[1]              # final per-node util_msg, lane-dense [A, N]


def pallas_message_passing(src_if, dst_if, src_iu, dst_iu, fv, uv, keep,
                           s_srcT, s_dstT, s_dst, *, num_iters, num_acts):
    a = num_acts
    n = s_srcT.shape[0]
    e_pad = fv.shape[-1]
    sz = int(np.dtype(s_srcT.dtype).itemsize)
    # Un-gridded kernel: everything is resident at once -> budget VMEM explicitly
    # (v5e scoped default is only 16 MiB, v7x 32 MiB; v7x physical is 64 MiB).
    est = (4 * a * e_pad * 4 + 2 * a * 8 * e_pad * 4 + e_pad * 4
           + 3 * n * e_pad * sz
           + 12 * a * e_pad * 4 + 6 * a * 8 * e_pad * 4 + a * n * 8)
    vmem_limit = int(min(max(2 * est, 32 * 1024 * 1024), 64 * 1024 * 1024))
    unroll = True if num_iters <= 8 else 2
    kernel = functools.partial(_mp_kernel, num_iters=num_iters, num_acts=num_acts,
                               unroll=unroll)
    return pl.pallas_call(
        kernel,
        out_shape=jax.ShapeDtypeStruct((a, n), jnp.float32),
        in_specs=[_VMEM] * 10,
        out_specs=_VMEM,
        compiler_params=pltpu.CompilerParams(vmem_limit_bytes=vmem_limit),
    )(src_if, dst_if, src_iu, dst_iu, fv, uv, keep, s_srcT, s_dstT, s_dst)


# ----------------------------- parameter init & forward glue -----------------------------

def init_params(key, dim_in_node, dim_in_edge, dim_in_u, mid_pair, num_acts):
    dims = {
        'joint_factor': (dim_in_edge + dim_in_u, num_acts * mid_pair),
        'indiv_factor': (dim_in_node + dim_in_u, num_acts),
        'joint_util': (dim_in_edge + dim_in_u, num_acts * mid_pair),
        'indiv_util': (dim_in_node + dim_in_u, num_acts),
        'edge_flag_repr': (dim_in_edge + dim_in_u, mid_pair),
        'edge_classifier': (mid_pair, 2),
    }
    params = {}
    for name, (din, dout) in dims.items():
        key, k1, k2 = jax.random.split(key, 3)
        bound = 1.0 / float(np.sqrt(din))
        params[name] = {
            'w': jax.random.uniform(k1, (din, dout), jnp.float32, -bound, bound),
            'b': jax.random.uniform(k2, (dout,), jnp.float32, -bound, bound),
        }
    return params


def _pack_joint(w, b, a, p, p8):
    # w: [din, A*P] -> wT [A*P8, din] with the pair dim zero-padded to a sublane tile
    din = w.shape[0]
    wt = jnp.pad(w.T.reshape(a, p, din), ((0, 0), (0, p8 - p), (0, 0))).reshape(a * p8, din)
    bt = jnp.pad(b.reshape(a, p), ((0, 0), (0, p8 - p))).reshape(a * p8, 1)
    return wt, bt


def mrf_forward(params, edge_feats, node_feats, graph_feats, edge_feat_reflected,
                src, dst, idx_revs, edge_graph_id, node_graph_id, first_node_idx,
                num_iters, num_acts, mid_pair, tile_e=512,
                structure_dtype=jnp.bfloat16):
    del idx_revs  # see TODO below: explicit reverse-edge symmetrization is a no-op here
    n = node_feats.shape[0]
    e = edge_feats.shape[0]
    a, p = num_acts, mid_pair
    p8 = _round_up(p, 8)

    # graph features broadcast to edges / nodes (edata['u_feat'] / ndata['u_feat']);
    # built directly in transposed (lane-dense) layout - no separate relayout pass.
    u_edge_t = graph_feats[edge_graph_id].T                              # [du, E]
    u_node_t = graph_feats[node_graph_id].T                              # [du, N]
    node_in_t = jnp.concatenate([node_feats.T, u_node_t], axis=0)        # [din_n, N]
    edge_in_t = jnp.concatenate([edge_feats.T, u_edge_t], axis=0)        # [din_e, E]
    edge_in_ref_t = jnp.concatenate([edge_feat_reflected.T, u_edge_t], axis=0)

    # fused node linear: [indiv_factor | indiv_util] -> [2A, N] (lane-dense on N)
    w_node = jnp.concatenate([params['indiv_factor']['w'], params['indiv_util']['w']], axis=1)
    b_node = jnp.concatenate([params['indiv_factor']['b'], params['indiv_util']['b']], axis=0)
    node_fiu = node_linear_t(node_in_t, w_node, b_node)                  # [2A, N]
    node_if, node_iu = node_fiu[:a], node_fiu[a:]

    # pad edges so the fused edge kernel gets a clean parallel grid
    tile_e = min(tile_e, _round_up(max(e, 1), 128))
    e_pad = _round_up(e, tile_e)
    pad = e_pad - e
    edge_in_t = jnp.pad(edge_in_t, ((0, 0), (0, pad)))
    edge_in_ref_t = jnp.pad(edge_in_ref_t, ((0, 0), (0, pad)))

    # pack weights transposed, pair dim padded to 8 so all in-kernel slices are aligned
    wf, bf = _pack_joint(params['joint_factor']['w'], params['joint_factor']['b'], a, p, p8)
    wu, bu = _pack_joint(params['joint_util']['w'], params['joint_util']['b'], a, p, p8)
    wfl = jnp.pad(params['edge_flag_repr']['w'].T, ((0, p8 - p), (0, 0)))
    bfl = jnp.pad(params['edge_flag_repr']['b'], (0, p8 - p)).reshape(-1, 1)
    wc = jnp.pad(params['edge_classifier']['w'].T, ((0, 0), (0, p8 - p)))
    bc = params['edge_classifier']['b'].reshape(-1, 1)

    # ONE fused gridded kernel: 6 edge-side Linears + pairwise tables + flag classifier.
    # fv/uv are emitted already lane-flipped as [A, A, E_pad]; keep as [1, E_pad].
    fv, uv, keep = edge_tables(edge_in_t, edge_in_ref_t, wf, bf, wu, bu, wfl, bfl, wc, bc,
                               num_acts=a, p_pad=p8, tile_e=tile_e)

    # TODO(synk): reference uses external gumbel_softmax(logits, idx_revs, hard=True)
    # (stochastic, reverse-symmetrized).  Approximated by the deterministic in-kernel
    # hard argmax (class 0 == "keep edge"); since edge_flag_repr*edge_flag_repr_ref is
    # symmetric across reverse-edge pairs, the explicit idx_revs symmetrization is a no-op.
    valid = (jnp.arange(e_pad) < e).astype(jnp.float32)[None, :]
    keep = keep * valid                                    # padded edges never pass messages

    # loop-invariant per-edge gathers of node factors/utilities (exact index gather)
    if pad:
        src_i = jnp.concatenate([src, jnp.zeros((pad,), src.dtype)])
        dst_i = jnp.concatenate([dst, jnp.zeros((pad,), dst.dtype)])
        src_m = jnp.concatenate([src, jnp.full((pad,), -1, src.dtype)])
        dst_m = jnp.concatenate([dst, jnp.full((pad,), -1, dst.dtype)])
    else:
        src_i, dst_i, src_m, dst_m = src, dst, src, dst
    src_if_e = jnp.take(node_if, src_i, axis=1)            # [A, E_pad]
    dst_if_e = jnp.take(node_if, dst_i, axis=1)
    src_iu_e = jnp.take(node_iu, src_i, axis=1)
    dst_iu_e = jnp.take(node_iu, dst_i, axis=1)

    # graph structure as (bf16, exact) one-hot matrices; padded edges get all-zero
    # rows/columns so they never gather or scatter.  s_dst is pre-transposed so the
    # in-loop scatter is a plain NN matmul (no per-iteration [N,E] transpose).
    # TODO(synk): index-based DMA gather/scatter would remove the O(N*E) one-hots for
    # very large sparse graphs.
    node_ids = jnp.arange(n)
    s_srcT = (node_ids[:, None] == src_m[None, :]).astype(structure_dtype)   # [N, E_pad]
    s_dstT = (node_ids[:, None] == dst_m[None, :]).astype(structure_dtype)   # [N, E_pad]
    s_dst = (dst_m[:, None] == node_ids[None, :]).astype(structure_dtype)    # [E_pad, N]

    node_um = pallas_message_passing(src_if_e, dst_if_e, src_iu_e, dst_iu_e,
                                     fv, uv, keep, s_srcT, s_dstT, s_dst,
                                     num_iters=num_iters, num_acts=a)        # [A, N]

    # (g.ndata['util_msg'] + g.ndata['indiv_util'])[0] for each sub-graph
    util_total = node_um + node_iu                                            # [A, N]
    return jnp.take(util_total, first_node_idx, axis=1).T                     # [B, A]


# ----------------------------- demo -----------------------------

if __name__ == "__main__":
    dim_in_node, dim_in_edge, dim_in_u = 5, 6, 4
    mid_pair, num_acts = 7, 5
    nodes_per_graph = [3, 3]          # 2 fully-connected (bidirectional) sub-graphs
    B = len(nodes_per_graph)

    src_list, dst_list, edge_graph_id, node_graph_id, first_node_idx = [], [], [], [], []
    offset = 0
    for g, n_g in enumerate(nodes_per_graph):
        first_node_idx.append(offset)
        node_graph_id += [g] * n_g
        for i in range(n_g):
            for j in range(n_g):
                if i != j:
                    src_list.append(offset + i)
                    dst_list.append(offset + j)
                    edge_graph_id.append(g)
        offset += n_g
    src = np.array(src_list, dtype=np.int32)
    dst = np.array(dst_list, dtype=np.int32)
    E, N = src.shape[0], offset

    # reverse-edge ids (graph.edge_ids(dst, src))
    idx_revs = np.zeros(E, dtype=np.int32)
    for ei in range(E):
        for ej in range(E):
            if src[ej] == dst[ei] and dst[ej] == src[ei]:
                idx_revs[ei] = ej
                break
    num_iters = max(nodes_per_graph)   # for a in range(max(batch_num_nodes))

    key = jax.random.PRNGKey(0)
    key, kp, k1, k2, k3 = jax.random.split(key, 5)
    params = init_params(kp, dim_in_node, dim_in_edge, dim_in_u, mid_pair, num_acts)
    edge_feats = jax.random.normal(k1, (E, dim_in_edge), jnp.float32)
    edge_feat_reflected = edge_feats[idx_revs]
    node_feats = jax.random.normal(k2, (N, dim_in_node), jnp.float32)
    graph_feats = jax.random.normal(k3, (B, dim_in_u), jnp.float32)

    out = mrf_forward(params, edge_feats, node_feats, graph_feats, edge_feat_reflected,
                      jnp.asarray(src), jnp.asarray(dst), jnp.asarray(idx_revs),
                      jnp.asarray(edge_graph_id, dtype=jnp.int32),
                      jnp.asarray(node_graph_id, dtype=jnp.int32),
                      jnp.asarray(first_node_idx, dtype=jnp.int32),
                      num_iters, num_acts, mid_pair)
    out = jax.block_until_ready(out)
    assert out.shape == (B, num_acts) and bool(jnp.all(jnp.isfinite(out)))
    print("KERNEL_OK")
</pallas_src>

<mosaic_0001>
module attributes {stable_mosaic.version = 11 : i64} {
  func.func @_node_linear_kernel(%arg0: memref<9x6xf32, #tpu.memory_space<vmem>>, %arg1: memref<10x9xf32, #tpu.memory_space<vmem>>, %arg2: memref<10x1xf32, #tpu.memory_space<vmem>>, %arg3: memref<10x6xf32, #tpu.memory_space<vmem>>) attributes {dimension_semantics = [], scalar_prefetch = 0 : i64, scratch_operands = 0 : i64, tpu.core_type = #tpu.core_type<tc>} {
    %c0 = arith.constant 0 : index
    %c0_0 = arith.constant 0 : index
    %0 = vector.load %arg1[%c0, %c0_0] : memref<10x9xf32, #tpu.memory_space<vmem>>, vector<10x9xf32>
    %c0_1 = arith.constant 0 : index
    %c0_2 = arith.constant 0 : index
    %1 = vector.load %arg0[%c0_1, %c0_2] : memref<9x6xf32, #tpu.memory_space<vmem>>, vector<9x6xf32>
    %cst = arith.constant dense<0.000000e+00> : vector<10x6xf32>
    %2 = tpu.matmul %0, %1, %cst {dimension_numbers = #tpu.dot_dimension_numbers<[1], [0], [0], [1], [0, 0, 1, 1], [], []>} : vector<10x9xf32>, vector<9x6xf32>, vector<10x6xf32> -> vector<10x6xf32>
    %c0_3 = arith.constant 0 : index
    %c0_4 = arith.constant 0 : index
    %3 = vector.load %arg2[%c0_3, %c0_4] : memref<10x1xf32, #tpu.memory_space<vmem>>, vector<10x1xf32>
    %4 = vector.broadcast %3 : vector<10x1xf32> to vector<10x6xf32>
    %5 = arith.addf %2, %4 : vector<10x6xf32>
    %c0_5 = arith.constant 0 : index
    %c0_6 = arith.constant 0 : index
    %6 = vector.load %arg3[%c0_5, %c0_6] : memref<10x6xf32, #tpu.memory_space<vmem>>, vector<10x6xf32>
    tpu.vector_store %arg3[%c0_5, %c0_6], %5 {strides = array<i32>} : memref<10x6xf32, #tpu.memory_space<vmem>>, vector<10x6xf32>,
    return
  }
}

</mosaic_0001>

<bundles_post_ra>
// kernel: tpu_custom_call.1
= control target key start
LH: loop header
LB: loop body
LE: loop exit
PB: predicated region body
PF: predicated region fallthrough
CT: control target
= control target key end

     0   :  { %vm37_vm0 = vcmask 1040384   ;;  %vm30_vm1 = vcmask 72704   ;;  %vm147_vm2 = vmmov 1   ;;  %v148_v2 = vmov 0   ;;  %s195_s0 = inlined_call_operand.vmem [shape: f32[9,6], index: 0, kind: input, shape index: {}]   ;;  %s196_s1 = inlined_call_operand.vmem [shape: f32[10,9], index: 1, kind: input, shape index: {}]   ;;  %s197_s2 = inlined_call_operand.vmem [shape: f32[10,1], index: 2, kind: input, shape index: {}]   ;;  %s198_s3 = inlined_call_operand.vmem [shape: f32[10,6], index: 3, kind: output, shape index: {}]  }
   0x1   :  { %v16_v0 = vld [vmem:[%s195_s0] sm:$0xff]  ;;  %v17_v1 = vld [vmem:[%s195_s0 + $0x8] sm:$0x1]  ;;  %vm139_vm3 = vmpackc.low %vm37_vm0, %vm147_vm2  ;;  %146 = vset.pattern.permute.xlu0 %v148_v2  ;;  %vm118_vm4 = vcmask 41984   ;;  %vm116_vm5 = vcmask 48128  }
   0x2   :  { %v138_v3 = vpack.c.bf16 %v17_v1, %v16_v0  ;;  %v14_v4 = vld [vmem:[%s196_s1] sm:$0xff]  ;;  %v19_v6 = vld [vmem:[%s197_s2 + $0x8] sm:$0x3] }
   0x3   :  { %v18_v5 = vld [vmem:[%s197_s2] sm:$0xff]  ;;  %135 = vmatprep.mubr.msk.f32.mxu0 %vm30_vm1, %v14_v4  ;;  %v15_v7 = vld [vmem:[%s196_s1 + $0x8] sm:$0x3] }
   0x4   :  { %22 = vperm.xlu0 %146, %v18_v5   ;;  %140 = vmatprep.subr.msk.bf16.mxu0 %vm139_vm3, %v138_v3 }
   0x5   :  { %143 = vmatpush3.bf16.msk.msra.mxu0 %vm139_vm3, %v138_v3 }
   0x8   :  { %27 = vperm.xlu0 %146, %v19_v6   ;;  %136 = vmatmul.mubr.msk.f32.vlgmr.msra.gmra.mrb[0].mxu0 %vm30_vm1, %v15_v7 }
  0x83   :  { %v23_v8 = vpop.permute.xlu0 %22 }
  0x87   :  { %v28_v9 = vpop.permute.xlu0 %27 }
  0xdb   :  { %v137_v10 = vpop.f32.mrb[0].mxu0 }
  0xdc   :  { %v113_v11 = vadd.f32 %v137_v10, %v28_v9  ;;  %v107_v12 = vpop.f32.mrb[1].mxu0 }
  0xdd   :  { %v108_v13 = vadd.f32 %v107_v12, %v23_v8 }
  0xde   :  { %119 = vst.msk [vmem:[%s198_s3 + $0x8] sm:$0x3] %vm118_vm4, %v113_v11 }
  0xdf   :  { %117 = vst.msk [vmem:[%s198_s3] sm:$0xff] %vm116_vm5, %v108_v13 }

</bundles_post_ra>
